<compile_context>
chip_gen: v5e
topology: v5e:2x2
jax: 0.10.0
libtpu: 0.0.40
codegen_flags: <defaults>
</compile_context>

<pallas_src>
import functools
import numpy as np
import jax
import jax.numpy as jnp
from jax.experimental import pallas as pl
from jax.experimental.pallas import tpu as pltpu

LOSS_THRESH = 50.0
LANES = 128
TILE_ROWS_MAX = 2048        # 2048*128*4B = 1 MiB f32 block per input
PALLAS_MIN_ELEMS = 4096     # below this (largest loss tensor) use the jnp fast path

LOSS_CLASS = {
    'det': ['CenterMap'],
    'reg': ['MPJPE', 'PAMPJPE', 'P_KP2D', 'Pose', 'Shape', 'Prior'],
}
ALL_LOSS_NAMES = [n for lst in LOSS_CLASS.values() for n in lst]
# one extra loss key not in all_loss_names to exercise the "Others" path
LOSS_NAMES = ALL_LOSS_NAMES + ['ExtraReproj']


# --------------------------------------------------------------------------
# Pallas kernel: per-loss partial sums into (L, 8, 128) resident accumulators
# --------------------------------------------------------------------------
def _make_sum_kernel(main_rows, tile_rows, num_tiles, total_tiles):
    L = len(main_rows)

    def block_partial(ref, r):
        """Sum rows [0, r) of a (tile_rows, 128) input ref into one (8,128) f32."""
        if r <= 8:
            part = ref[0:r, :].astype(jnp.float32)
            if r < 8:
                part = jnp.concatenate(
                    [part, jnp.zeros((8 - r, LANES), jnp.float32)], axis=0)
            return part
        n8, rem = divmod(r, 8)
        nch = min(8, n8)
        # nch independent accumulation chains (VALU ILP; fp adds are not
        # compiler-reassociable), combined with a small tree at the end.
        chains = [ref[8 * c:8 * (c + 1), :].astype(jnp.float32)
                  for c in range(nch)]
        for g in range(nch, n8):
            c = g % nch
            chains[c] = chains[c] + ref[8 * g:8 * (g + 1), :].astype(jnp.float32)
        if rem:
            tail = ref[8 * n8:8 * n8 + rem, :].astype(jnp.float32)
            tail = jnp.concatenate(
                [tail, jnp.zeros((8 - rem, LANES), jnp.float32)], axis=0)
            chains[0] = chains[0] + tail
        while len(chains) > 1:
            nxt = [chains[k] + chains[k + 1]
                   for k in range(0, len(chains) - 1, 2)]
            if len(chains) % 2:
                nxt.append(chains[-1])
            chains = nxt
        return chains[0]

    def kernel(*refs):
        x_refs = refs[:L]
        out_ref = refs[L]                 # (L, 8, 128) f32 accumulator (grid-resident)
        j = pl.program_id(0)

        @pl.when(j == 0)
        def _init():
            out_ref[...] = jnp.zeros_like(out_ref)

        for i in range(L):
            r_i, t_i, n_i = main_rows[i], tile_rows[i], num_tiles[i]

            def full_step(i=i, t_i=t_i):
                out_ref[i, :, :] = out_ref[i, :, :] + block_partial(x_refs[i], t_i)

            last_valid = r_i - (n_i - 1) * t_i     # valid rows in the last tile (static)
            if n_i > 1 and last_valid != t_i:
                # ragged last tile: accumulate only its valid rows (runs once)
                def last_step(i=i, last_valid=last_valid):
                    out_ref[i, :, :] = (out_ref[i, :, :]
                                        + block_partial(x_refs[i], last_valid))
                pl.when(j < n_i - 1)(full_step)
                pl.when(j == n_i - 1)(last_step)
            elif n_i < total_tiles:
                # input exhausted after n_i steps: skip all work (no masked no-ops)
                pl.when(j < n_i)(full_step)
            else:
                full_step()

    return kernel


@functools.lru_cache(maxsize=None)
def _build_sum_kernel(main_rows, dtypes, tile_rows_max):
    assert tile_rows_max >= 8 and tile_rows_max % 8 == 0
    L = len(main_rows)
    tile_rows = tuple(min(r, tile_rows_max) for r in main_rows)
    num_tiles = tuple(pl.cdiv(r, t) for r, t in zip(main_rows, tile_rows))
    total_tiles = max(num_tiles)

    def make_index_map(nt):
        if nt == total_tiles:
            return lambda j: (j, 0)
        last = nt - 1
        return lambda j: (jnp.minimum(j, last), 0)   # clamp; work skipped via pl.when

    in_specs = [pl.BlockSpec((tile_rows[i], LANES), make_index_map(num_tiles[i]))
                for i in range(L)]
    out_spec = pl.BlockSpec((L, 8, LANES), lambda j: (0, 0, 0))

    kernel = _make_sum_kernel(main_rows, tile_rows, num_tiles, total_tiles)

    # Explicit VMEM budget: double-buffered input blocks + resident accumulator.
    in_bytes = sum(2 * tile_rows[i] * LANES * dtypes[i].itemsize for i in range(L))
    out_bytes = L * 8 * LANES * 4
    vmem_limit = int(min(max(in_bytes + out_bytes + (4 << 20), 32 << 20), 48 << 20))

    fn = pl.pallas_call(
        kernel,
        out_shape=jax.ShapeDtypeStruct((L, 8, LANES), jnp.float32),
        grid_spec=pltpu.PrefetchScalarGridSpec(
            num_scalar_prefetch=0,
            grid=(total_tiles,),
            in_specs=in_specs,
            out_specs=out_spec),
        compiler_params=pltpu.CompilerParams(
            dimension_semantics=("arbitrary",),      # reduction axis (output revisited)
            vmem_limit_bytes=vmem_limit),
    )
    return jax.jit(fn)


# --------------------------------------------------------------------------
# Forward (jitted per static config)
# --------------------------------------------------------------------------
def _forward_impl(loss_vals, *, counts, det_idx, reg_idx, oth_idx,
                  use_pallas, tile_rows_max):
    flats = [jnp.ravel(v) for v in loss_vals]
    zero = jnp.zeros((), jnp.float32)

    if use_pallas:
        # 128-multiple main parts go through the Pallas kernel (native dtype,
        # f32 upcast in-kernel, no pad copies); <128-element tails use jnp.sum.
        kern_inputs, kern_rows, kern_slot, tail_sums = [], [], [], {}
        for idx, flat in enumerate(flats):
            rows, tail = divmod(counts[idx], LANES)
            if rows:
                kern_slot.append(idx)
                kern_rows.append(rows)
                kern_inputs.append(flat[:rows * LANES].reshape(rows, LANES))
            if tail:
                tail_sums[idx] = jnp.sum(flat[rows * LANES:].astype(jnp.float32))
        kern_sums = None
        if kern_inputs:
            fn = _build_sum_kernel(tuple(kern_rows),
                                   tuple(x.dtype for x in kern_inputs),
                                   tile_rows_max)
            acc = fn(*kern_inputs)                    # (Lk, 8, 128) partial sums
            kern_sums = jnp.sum(acc, axis=(1, 2))     # (Lk,)
        kern_pos = {slot: p for p, slot in enumerate(kern_slot)}
        means = []
        for idx in range(len(flats)):
            s = tail_sums.get(idx, zero)
            if idx in kern_pos:
                s = s + kern_sums[kern_pos[idx]]
            means.append(s / counts[idx])             # divide by TRUE element count
    else:
        # small-input fast path: plain jnp reductions, XLA-fused
        means = [jnp.mean(f.astype(jnp.float32)) for f in flats]

    # forward value of torch's `v / (v.item()/thresh)` is thresh -> minimum is exact.
    # NOTE: gradients would differ above the threshold (forward-only use here).
    capped = [jnp.minimum(m, LOSS_THRESH) for m in means]
    loss = sum(capped, zero)
    det_loss = sum([means[i] for i in det_idx], zero)
    reg_loss = sum([means[i] for i in reg_idx], zero)
    left_loss = sum([means[i] for i in oth_idx], zero)
    return loss, det_loss, reg_loss, left_loss, tuple(means)


_forward_jit = jax.jit(
    _forward_impl,
    static_argnames=("counts", "det_idx", "reg_idx", "oth_idx",
                     "use_pallas", "tile_rows_max"))


def learnable_loss_forward(outputs, view=None, use_pallas=None,
                           tile_rows_max=TILE_ROWS_MAX):
    prefix = f'{view}_' if view is not None else ''
    loss_dict_in = outputs[prefix + 'loss_dict']
    names = [k for k, v in loss_dict_in.items() if not isinstance(v, int)]
    # TODO(synk): args().model_return_loss PAMPJPE recomputation (calc_pampjpe /
    # Procrustes alignment on gathered keypoints) is config-gated off by default
    # and is not implemented here.

    vals = tuple(jnp.asarray(loss_dict_in[n]) for n in names)
    counts = tuple(int(v.size) for v in vals)
    det_idx = tuple(i for i, n in enumerate(names) if n in LOSS_CLASS['det'])
    reg_idx = tuple(i for i, n in enumerate(names) if n in LOSS_CLASS['reg'])
    oth_idx = tuple(i for i, n in enumerate(names) if n not in ALL_LOSS_NAMES)

    if use_pallas is None:
        use_pallas = bool(counts) and max(counts) >= PALLAS_MIN_ELEMS

    loss, det_loss, reg_loss, left_loss, means = _forward_jit(
        vals, counts=counts, det_idx=det_idx, reg_idx=reg_idx, oth_idx=oth_idx,
        use_pallas=bool(use_pallas), tile_rows_max=int(tile_rows_max))

    loss_tasks = {'reg': reg_loss, 'det': det_loss}
    # 'Others' key presence decided statically by name membership (PyTorch checks
    # the runtime value != 0; this avoids a device->host sync).
    if oth_idx:
        loss_tasks['Others'] = left_loss
    outputs[prefix + 'loss_dict'] = dict(
        loss_tasks, **{n: means[i] for i, n in enumerate(names)})
    return loss, outputs


# --------------------------------------------------------------------------
# Self-test
# --------------------------------------------------------------------------
if __name__ == "__main__":
    key = jax.random.PRNGKey(0)
    shapes = {
        'CenterMap':   (2, 1, 64, 64),   # 8192 elems -> 64 rows (stored as bf16)
        'MPJPE':       (2, 54, 3),       # 324 = 2 rows + 68-elem tail
        'PAMPJPE':     (2, 54),          # 108 = tail only (no kernel rows)
        'P_KP2D':      (2, 64),          # 128 = 1 row
        'Pose':        (2, 72),          # 144 = 1 row + 16-elem tail
        'Shape':       (2, 10),          # 20  = tail only
        'Prior':       (2, 64),          # 128 = 1 row
        'ExtraReproj': (2, 20, 64),      # 2560 = 20 rows (ragged under tile=16)
    }
    scales = {'CenterMap': 2.0, 'MPJPE': 80.0, 'PAMPJPE': 60.0, 'P_KP2D': 5.0,
              'Pose': 1.0, 'Shape': 0.5, 'Prior': 3.0, 'ExtraReproj': 4.0}
    keys = jax.random.split(key, len(LOSS_NAMES))
    loss_dict = {}
    for name, k in zip(LOSS_NAMES, keys):
        v = jnp.abs(jax.random.normal(k, shapes[name], jnp.float32)) * scales[name]
        if name == 'CenterMap':
            v = v.astype(jnp.bfloat16)   # exercise native-dtype input (in-kernel upcast)
        loss_dict[name] = v

    def numpy_ref(ld):
        means = {n: float(np.mean(np.asarray(v.astype(jnp.float32))))
                 for n, v in ld.items()}
        total = sum(m if m < LOSS_THRESH else m / (m / LOSS_THRESH)
                    for m in means.values())
        det = sum(means[n] for n in LOSS_CLASS['det'] if n in means)
        reg = sum(means[n] for n in LOSS_CLASS['reg'] if n in means)
        left = sum(means[n] for n in means if n not in ALL_LOSS_NAMES)
        return means, total, det, reg, left

    def check(loss, outs, ld):
        means, total, det, reg, left = numpy_ref(ld)
        out_ld = outs['loss_dict']
        assert np.allclose(float(loss), total, rtol=1e-4, atol=1e-5)
        assert np.allclose(float(out_ld['det']), det, rtol=1e-4, atol=1e-5)
        assert np.allclose(float(out_ld['reg']), reg, rtol=1e-4, atol=1e-5)
        assert np.allclose(float(out_ld['Others']), left, rtol=1e-4, atol=1e-5)
        for n in ld:
            assert np.allclose(float(out_ld[n]), means[n], rtol=1e-4, atol=1e-5), n

    # (a) Pallas path, default 1 MiB tiles (every loss fits a single tile)
    outs_a = {'loss_dict': dict(loss_dict), 'detection_flag': True}
    loss_a, outs_a = learnable_loss_forward(outs_a, use_pallas=True)
    jax.block_until_ready(loss_a)
    check(loss_a, outs_a, loss_dict)

    # (b) Pallas path with tiny (16-row) tiles: exercises multi-tile, ragged
    #     last tile and exhausted-input (pl.when) code paths on the same data
    outs_b = {'loss_dict': dict(loss_dict), 'detection_flag': True}
    loss_b, outs_b = learnable_loss_forward(outs_b, use_pallas=True, tile_rows_max=16)
    jax.block_until_ready(loss_b)
    check(loss_b, outs_b, loss_dict)

    # (c) small-input fast path (no Pallas), auto-selected
    small_keys = jax.random.split(jax.random.PRNGKey(1), len(LOSS_NAMES))
    small_ld = {n: jnp.abs(jax.random.normal(k, (2, 64), jnp.float32)) * scales[n]
                for n, k in zip(LOSS_NAMES, small_keys)}
    outs_c = {'loss_dict': dict(small_ld), 'detection_flag': True}
    loss_c, outs_c = learnable_loss_forward(outs_c)
    jax.block_until_ready(loss_c)
    check(loss_c, outs_c, small_ld)

    print("KERNEL_OK")
</pallas_src>

<mosaic_0001>
module attributes {stable_mosaic.version = 11 : i64} {
  func.func @kernel(%arg0: i32, %arg1: memref<64x128xbf16, #tpu.memory_space<vmem>>, %arg2: memref<2x128xf32, #tpu.memory_space<vmem>>, %arg3: memref<1x128xf32, #tpu.memory_space<vmem>>, %arg4: memref<1x128xf32, #tpu.memory_space<vmem>>, %arg5: memref<1x128xf32, #tpu.memory_space<vmem>>, %arg6: memref<20x128xf32, #tpu.memory_space<vmem>>, %arg7: memref<6x8x128xf32, #tpu.memory_space<vmem>>) attributes {dimension_semantics = [#tpu.dimension_semantics<arbitrary>], iteration_bounds = array<i64: 1>, scalar_prefetch = 0 : i64, scratch_operands = 0 : i64, tpu.core_type = #tpu.core_type<tc>, window_params = [{transform_indices = @transform_0, window_bounds = array<i64: 64, 128>}, {transform_indices = @transform_1, window_bounds = array<i64: 2, 128>}, {transform_indices = @transform_2, window_bounds = array<i64: 1, 128>}, {transform_indices = @transform_3, window_bounds = array<i64: 1, 128>}, {transform_indices = @transform_4, window_bounds = array<i64: 1, 128>}, {transform_indices = @transform_5, window_bounds = array<i64: 20, 128>}, {pipeline_mode = #tpu.pipeline_mode<synchronous>, transform_indices = @transform_6, window_bounds = array<i64: 6, 8, 128>}]} {
    %c0_i32 = arith.constant 0 : i32
    %0 = arith.cmpi eq, %arg0, %c0_i32 : i32
    %1 = arith.extui %0 : i1 to i32
    %c0_i32_0 = arith.constant 0 : i32
    %2 = arith.cmpi ne, %1, %c0_i32_0 : i32
    scf.if %2 {
      %cst_58 = arith.constant 0.000000e+00 : f32
      %81 = vector.broadcast %cst_58 : f32 to vector<6x8x128xf32>
      %c0_59 = arith.constant 0 : index
      %c0_60 = arith.constant 0 : index
      %c0_61 = arith.constant 0 : index
      %82 = vector.load %arg7[%c0_59, %c0_60, %c0_61] : memref<6x8x128xf32, #tpu.memory_space<vmem>>, vector<6x8x128xf32>
      tpu.vector_store %arg7[%c0_59, %c0_60, %c0_61], %81 {strides = array<i32>} : memref<6x8x128xf32, #tpu.memory_space<vmem>>, vector<6x8x128xf32>,
    } else {
    }
    %c0 = arith.constant 0 : index
    %c0_1 = arith.constant 0 : index
    %c0_2 = arith.constant 0 : index
    %3 = vector.load %arg7[%c0, %c0_1, %c0_2] : memref<6x8x128xf32, #tpu.memory_space<vmem>>, vector<1x8x128xf32>
    %4 = vector.shape_cast %3 : vector<1x8x128xf32> to vector<8x128xf32>
    %c0_3 = arith.constant 0 : index
    %c0_4 = arith.constant 0 : index
    %5 = vector.load %arg1[%c0_3, %c0_4] : memref<64x128xbf16, #tpu.memory_space<vmem>>, vector<8x128xbf16>
    %6 = arith.extf %5 : vector<8x128xbf16> to vector<8x128xf32>
    %c8 = arith.constant 8 : index
    %c0_5 = arith.constant 0 : index
    %7 = vector.load %arg1[%c8, %c0_5] : memref<64x128xbf16, #tpu.memory_space<vmem>>, vector<8x128xbf16>
    %8 = arith.extf %7 : vector<8x128xbf16> to vector<8x128xf32>
    %c16 = arith.constant 16 : index
    %c0_6 = arith.constant 0 : index
    %9 = vector.load %arg1[%c16, %c0_6] : memref<64x128xbf16, #tpu.memory_space<vmem>>, vector<8x128xbf16>
    %10 = arith.extf %9 : vector<8x128xbf16> to vector<8x128xf32>
    %c24 = arith.constant 24 : index
    %c0_7 = arith.constant 0 : index
    %11 = vector.load %arg1[%c24, %c0_7] : memref<64x128xbf16, #tpu.memory_space<vmem>>, vector<8x128xbf16>
    %12 = arith.extf %11 : vector<8x128xbf16> to vector<8x128xf32>
    %c32 = arith.constant 32 : index
    %c0_8 = arith.constant 0 : index
    %13 = vector.load %arg1[%c32, %c0_8] : memref<64x128xbf16, #tpu.memory_space<vmem>>, vector<8x128xbf16>
    %14 = arith.extf %13 : vector<8x128xbf16> to vector<8x128xf32>
    %c40 = arith.constant 40 : index
    %c0_9 = arith.constant 0 : index
    %15 = vector.load %arg1[%c40, %c0_9] : memref<64x128xbf16, #tpu.memory_space<vmem>>, vector<8x128xbf16>
    %16 = arith.extf %15 : vector<8x128xbf16> to vector<8x128xf32>
    %c48 = arith.constant 48 : index
    %c0_10 = arith.constant 0 : index
    %17 = vector.load %arg1[%c48, %c0_10] : memref<64x128xbf16, #tpu.memory_space<vmem>>, vector<8x128xbf16>
    %18 = arith.extf %17 : vector<8x128xbf16> to vector<8x128xf32>
    %c56 = arith.constant 56 : index
    %c0_11 = arith.constant 0 : index
    %19 = vector.load %arg1[%c56, %c0_11] : memref<64x128xbf16, #tpu.memory_space<vmem>>, vector<8x128xbf16>
    %20 = arith.extf %19 : vector<8x128xbf16> to vector<8x128xf32>
    %21 = arith.addf %6, %8 : vector<8x128xf32>
    %22 = arith.addf %10, %12 : vector<8x128xf32>
    %23 = arith.addf %14, %16 : vector<8x128xf32>
    %24 = arith.addf %18, %20 : vector<8x128xf32>
    %25 = arith.addf %21, %22 : vector<8x128xf32>
    %26 = arith.addf %23, %24 : vector<8x128xf32>
    %27 = arith.addf %25, %26 : vector<8x128xf32>
    %28 = arith.addf %4, %27 : vector<8x128xf32>
    %c0_12 = arith.constant 0 : index
    %c0_13 = arith.constant 0 : index
    %c0_14 = arith.constant 0 : index
    %29 = vector.load %arg7[%c0_12, %c0_13, %c0_14] : memref<6x8x128xf32, #tpu.memory_space<vmem>>, vector<1x8x128xf32>
    %30 = vector.shape_cast %29 : vector<1x8x128xf32> to vector<8x128xf32>
    %31 = vector.shape_cast %28 : vector<8x128xf32> to vector<1x8x128xf32>
    tpu.vector_store %arg7[%c0_12, %c0_13, %c0_14], %31 {strides = array<i32>} : memref<6x8x128xf32, #tpu.memory_space<vmem>>, vector<1x8x128xf32>,
    %c1 = arith.constant 1 : index
    %c0_15 = arith.constant 0 : index
    %c0_16 = arith.constant 0 : index
    %32 = vector.load %arg7[%c1, %c0_15, %c0_16] : memref<6x8x128xf32, #tpu.memory_space<vmem>>, vector<1x8x128xf32>
    %33 = vector.shape_cast %32 : vector<1x8x128xf32> to vector<8x128xf32>
    %c0_17 = arith.constant 0 : index
    %c0_18 = arith.constant 0 : index
    %34 = vector.load %arg2[%c0_17, %c0_18] : memref<2x128xf32, #tpu.memory_space<vmem>>, vector<2x128xf32>
    %cst = arith.constant 0.000000e+00 : f32
    %35 = vector.broadcast %cst : f32 to vector<6x128xf32>
    %36 = tpu.concatenate %34, %35 in 0 : vector<2x128xf32>, vector<6x128xf32> -> vector<8x128xf32>
    %37 = arith.addf %33, %36 : vector<8x128xf32>
    %c1_19 = arith.constant 1 : index
    %c0_20 = arith.constant 0 : index
    %c0_21 = arith.constant 0 : index
    %38 = vector.load %arg7[%c1_19, %c0_20, %c0_21] : memref<6x8x128xf32, #tpu.memory_space<vmem>>, vector<1x8x128xf32>
    %39 = vector.shape_cast %38 : vector<1x8x128xf32> to vector<8x128xf32>
    %40 = vector.shape_cast %37 : vector<8x128xf32> to vector<1x8x128xf32>
    tpu.vector_store %arg7[%c1_19, %c0_20, %c0_21], %40 {strides = array<i32>} : memref<6x8x128xf32, #tpu.memory_space<vmem>>, vector<1x8x128xf32>,
    %c2 = arith.constant 2 : index
    %c0_22 = arith.constant 0 : index
    %c0_23 = arith.constant 0 : index
    %41 = vector.load %arg7[%c2, %c0_22, %c0_23] : memref<6x8x128xf32, #tpu.memory_space<vmem>>, vector<1x8x128xf32>
    %42 = vector.shape_cast %41 : vector<1x8x128xf32> to vector<8x128xf32>
    %c0_24 = arith.constant 0 : index
    %c0_25 = arith.constant 0 : index
    %43 = vector.load %arg3[%c0_24, %c0_25] : memref<1x128xf32, #tpu.memory_space<vmem>>, vector<1x128xf32>
    %cst_26 = arith.constant 0.000000e+00 : f32
    %44 = vector.broadcast %cst_26 : f32 to vector<7x128xf32>
    %45 = tpu.concatenate %43, %44 in 0 : vector<1x128xf32>, vector<7x128xf32> -> vector<8x128xf32>
    %46 = arith.addf %42, %45 : vector<8x128xf32>
    %c2_27 = arith.constant 2 : index
    %c0_28 = arith.constant 0 : index
    %c0_29 = arith.constant 0 : index
    %47 = vector.load %arg7[%c2_27, %c0_28, %c0_29] : memref<6x8x128xf32, #tpu.memory_space<vmem>>, vector<1x8x128xf32>
    %48 = vector.shape_cast %47 : vector<1x8x128xf32> to vector<8x128xf32>
    %49 = vector.shape_cast %46 : vector<8x128xf32> to vector<1x8x128xf32>
    tpu.vector_store %arg7[%c2_27, %c0_28, %c0_29], %49 {strides = array<i32>} : memref<6x8x128xf32, #tpu.memory_space<vmem>>, vector<1x8x128xf32>,
    %c3 = arith.constant 3 : index
    %c0_30 = arith.constant 0 : index
    %c0_31 = arith.constant 0 : index
    %50 = vector.load %arg7[%c3, %c0_30, %c0_31] : memref<6x8x128xf32, #tpu.memory_space<vmem>>, vector<1x8x128xf32>
    %51 = vector.shape_cast %50 : vector<1x8x128xf32> to vector<8x128xf32>
    %c0_32 = arith.constant 0 : index
    %c0_33 = arith.constant 0 : index
    %52 = vector.load %arg4[%c0_32, %c0_33] : memref<1x128xf32, #tpu.memory_space<vmem>>, vector<1x128xf32>
    %cst_34 = arith.constant 0.000000e+00 : f32
    %53 = vector.broadcast %cst_34 : f32 to vector<7x128xf32>
    %54 = tpu.concatenate %52, %53 in 0 : vector<1x128xf32>, vector<7x128xf32> -> vector<8x128xf32>
    %55 = arith.addf %51, %54 : vector<8x128xf32>
    %c3_35 = arith.constant 3 : index
    %c0_36 = arith.constant 0 : index
    %c0_37 = arith.constant 0 : index
    %56 = vector.load %arg7[%c3_35, %c0_36, %c0_37] : memref<6x8x128xf32, #tpu.memory_space<vmem>>, vector<1x8x128xf32>
    %57 = vector.shape_cast %56 : vector<1x8x128xf32> to vector<8x128xf32>
    %58 = vector.shape_cast %55 : vector<8x128xf32> to vector<1x8x128xf32>
    tpu.vector_store %arg7[%c3_35, %c0_36, %c0_37], %58 {strides = array<i32>} : memref<6x8x128xf32, #tpu.memory_space<vmem>>, vector<1x8x128xf32>,
    %c4 = arith.constant 4 : index
    %c0_38 = arith.constant 0 : index
    %c0_39 = arith.constant 0 : index
    %59 = vector.load %arg7[%c4, %c0_38, %c0_39] : memref<6x8x128xf32, #tpu.memory_space<vmem>>, vector<1x8x128xf32>
    %60 = vector.shape_cast %59 : vector<1x8x128xf32> to vector<8x128xf32>
    %c0_40 = arith.constant 0 : index
    %c0_41 = arith.constant 0 : index
    %61 = vector.load %arg5[%c0_40, %c0_41] : memref<1x128xf32, #tpu.memory_space<vmem>>, vector<1x128xf32>
    %cst_42 = arith.constant 0.000000e+00 : f32
    %62 = vector.broadcast %cst_42 : f32 to vector<7x128xf32>
    %63 = tpu.concatenate %61, %62 in 0 : vector<1x128xf32>, vector<7x128xf32> -> vector<8x128xf32>
    %64 = arith.addf %60, %63 : vector<8x128xf32>
    %c4_43 = arith.constant 4 : index
    %c0_44 = arith.constant 0 : index
    %c0_45 = arith.constant 0 : index
    %65 = vector.load %arg7[%c4_43, %c0_44, %c0_45] : memref<6x8x128xf32, #tpu.memory_space<vmem>>, vector<1x8x128xf32>
    %66 = vector.shape_cast %65 : vector<1x8x128xf32> to vector<8x128xf32>
    %67 = vector.shape_cast %64 : vector<8x128xf32> to vector<1x8x128xf32>
    tpu.vector_store %arg7[%c4_43, %c0_44, %c0_45], %67 {strides = array<i32>} : memref<6x8x128xf32, #tpu.memory_space<vmem>>, vector<1x8x128xf32>,
    %c5 = arith.constant 5 : index
    %c0_46 = arith.constant 0 : index
    %c0_47 = arith.constant 0 : index
    %68 = vector.load %arg7[%c5, %c0_46, %c0_47] : memref<6x8x128xf32, #tpu.memory_space<vmem>>, vector<1x8x128xf32>
    %69 = vector.shape_cast %68 : vector<1x8x128xf32> to vector<8x128xf32>
    %c0_48 = arith.constant 0 : index
    %c0_49 = arith.constant 0 : index
    %70 = vector.load %arg6[%c0_48, %c0_49] : memref<20x128xf32, #tpu.memory_space<vmem>>, vector<8x128xf32>
    %c8_50 = arith.constant 8 : index
    %c0_51 = arith.constant 0 : index
    %71 = vector.load %arg6[%c8_50, %c0_51] : memref<20x128xf32, #tpu.memory_space<vmem>>, vector<8x128xf32>
    %c16_52 = arith.constant 16 : index
    %c0_53 = arith.constant 0 : index
    %72 = vector.load %arg6[%c16_52, %c0_53] : memref<20x128xf32, #tpu.memory_space<vmem>>, vector<4x128xf32>
    %cst_54 = arith.constant 0.000000e+00 : f32
    %73 = vector.broadcast %cst_54 : f32 to vector<4x128xf32>
    %74 = tpu.concatenate %72, %73 in 0 : vector<4x128xf32>, vector<4x128xf32> -> vector<8x128xf32>
    %75 = arith.addf %70, %74 : vector<8x128xf32>
    %76 = arith.addf %75, %71 : vector<8x128xf32>
    %77 = arith.addf %69, %76 : vector<8x128xf32>
    %c5_55 = arith.constant 5 : index
    %c0_56 = arith.constant 0 : index
    %c0_57 = arith.constant 0 : index
    %78 = vector.load %arg7[%c5_55, %c0_56, %c0_57] : memref<6x8x128xf32, #tpu.memory_space<vmem>>, vector<1x8x128xf32>
    %79 = vector.shape_cast %78 : vector<1x8x128xf32> to vector<8x128xf32>
    %80 = vector.shape_cast %77 : vector<8x128xf32> to vector<1x8x128xf32>
    tpu.vector_store %arg7[%c5_55, %c0_56, %c0_57], %80 {strides = array<i32>} : memref<6x8x128xf32, #tpu.memory_space<vmem>>, vector<1x8x128xf32>,
    return
  }
  func.func @transform_0(%arg0: i32) -> (i32, i32) {
    %c0_i32 = arith.constant 0 : i32
    %c0_i32_0 = arith.constant 0 : i32
    return %arg0, %c0_i32 : i32, i32
  }
  func.func @transform_1(%arg0: i32) -> (i32, i32) {
    %c0_i32 = arith.constant 0 : i32
    %c0_i32_0 = arith.constant 0 : i32
    return %arg0, %c0_i32 : i32, i32
  }
  func.func @transform_2(%arg0: i32) -> (i32, i32) {
    %c0_i32 = arith.constant 0 : i32
    %c0_i32_0 = arith.constant 0 : i32
    return %arg0, %c0_i32 : i32, i32
  }
  func.func @transform_3(%arg0: i32) -> (i32, i32) {
    %c0_i32 = arith.constant 0 : i32
    %c0_i32_0 = arith.constant 0 : i32
    return %arg0, %c0_i32 : i32, i32
  }
  func.func @transform_4(%arg0: i32) -> (i32, i32) {
    %c0_i32 = arith.constant 0 : i32
    %c0_i32_0 = arith.constant 0 : i32
    return %arg0, %c0_i32 : i32, i32
  }
  func.func @transform_5(%arg0: i32) -> (i32, i32) {
    %c0_i32 = arith.constant 0 : i32
    %c0_i32_0 = arith.constant 0 : i32
    return %arg0, %c0_i32 : i32, i32
  }
  func.func @transform_6(%arg0: i32) -> (i32, i32, i32) {
    %c0_i32 = arith.constant 0 : i32
    %c0_i32_0 = arith.constant 0 : i32
    %c0_i32_1 = arith.constant 0 : i32
    %c0_i32_2 = arith.constant 0 : i32
    return %c0_i32, %c0_i32_0, %c0_i32_1 : i32, i32, i32
  }
}

</mosaic_0001>

<bundles_post_ra>
// kernel: tpu_custom_call.1
= control target key start
LH: loop header
LB: loop body
LE: loop exit
PB: predicated region body
PF: predicated region fallthrough
CT: control target
= control target key end

     0   :  { %11 = vsyncpa [#allocation3], 0  ;;  %s367_s0 = inlined_call_operand.hbm [shape: bf16[64,128], index: 0, kind: input, shape index: {}]   ;;  %s368_s1 = inlined_call_operand.hbm [shape: f32[2,128], index: 1, kind: input, shape index: {}]   ;;  %s369_s2 = inlined_call_operand.vmem [shape: f32[1,128], index: 2, kind: input, shape index: {}]   ;;  %s370_s3 = inlined_call_operand.vmem [shape: f32[1,128], index: 3, kind: input, shape index: {}]   ;;  %s371_s4 = inlined_call_operand.vmem [shape: f32[1,128], index: 4, kind: input, shape index: {}]   ;;  %s372_s5 = inlined_call_operand.hbm [shape: f32[20,128], index: 5, kind: input, shape index: {}]   ;;  %s373_s6 = inlined_call_operand.hbm [shape: f32[6,8,128], index: 6, kind: output, shape index: {}]  }
   0x1   :  { %12 = vsyncpa [#allocation6], 0  ;;  %s32_s23 = sshll.u32 %s368_s1, 4  ;;  %s33_s23 = int_to_ptr.hbm [resolvable:$true] %s32_s23 }
   0x2   :  { %13 = vsyncpa [#allocation4], 0  ;;  %s292_s24 = smov [#allocation5]   ;;  %s18_s28 = sshll.u32 %s367_s0, 4  ;;  %s19_s28 = int_to_ptr.hbm [resolvable:$true] %s18_s28 }
   0x3   :  { %s34_s25 = sshll.u32 %s292_s24, 4  ;;  %s293_s29 = smov [#allocation2]   ;;  %s35_s25 = int_to_ptr.vmem [resolvable:$true] %s34_s25 }
   0x4   :  { %37 = dma.hbm_to_vmem [thread:$0]  %s33_s23, 32, %s35_s25, [#allocation6]  }
   0x5   :  { %s20_s30 = sshll.u32 %s293_s29, 4  ;;  %s294_s7 = smov 64   ;;  %s21_s30 = int_to_ptr.vmem [resolvable:$true] %s20_s30 }
   0x6   :  { %s295_s8 = smov 4   ;;  %s48_s1 = sshll.u32 %s372_s5, 4  ;;  %s49_s1 = int_to_ptr.hbm [resolvable:$true] %s48_s1 }
   0x7   :  { %26 = dma.hbm_to_vmem [thread:$0]  %s19_s28, 512, %s21_s30, [#allocation3], %s294_s7, %s294_s7, %s295_s8  }
   0x8   :  { %s296_s11 = smov [#allocation7]   ;;  %s297_s13 = smov 128  }
   0x9   :  { %s50_s12 = sshll.u32 %s296_s11, 4  ;;  %s298_s14 = smov 8   ;;  %s51_s12 = int_to_ptr.vmem [resolvable:$true] %s50_s12 }
   0xa   :  { %56 = dma.hbm_to_vmem [thread:$0]  %s49_s1, 384, %s51_s12, [#allocation6], %s297_s13, %s297_s13, %s298_s14  }
   0xb   :  { %286 = dma.done.wait [#allocation3], 512  }
   0xc   :  { %287 = vsyncadd [#allocation3], 4294966784 }
   0xd   :  { %288 = dma.done.wait [#allocation6], 416  }
   0xe   :  { %289 = vsyncadd [#allocation6], 4294966880  ;;  %v163_v0 = vld [vmem:[#allocation2] sm:$0xff]   ;;  %v178_v1 = vld [vmem:[#allocation2 + $0x8] sm:$0xff]   ;;  %vm108_vm0 = vcmask 1041408   ;;  %vm115_vm1 = vcmask 1040384  }
   0xf   :  { %v179_v2 = vld [vmem:[#allocation2 + $0x10] sm:$0xff]   ;;  %vm136_vm2 = vcmask 1043456   ;;  %v164_v3 = vunpack.c.l.bf16 %v163_v0  ;;  %v165_v4 = vunpack.c.h.bf16 %v163_v0  ;;  %v168_v5 = vunpack.c.l.bf16 %v178_v1  ;;  %v180_v7 = vld [vmem:[#allocation2 + $0x18] sm:$0xff]   ;;  %v107_v8 = vld [vmem:[#allocation5] sm:$0x3]  ;;  %s148_s20 = sshll.u32 %s373_s6, 4  ;;  %s149_s20 = int_to_ptr.hbm [resolvable:$true] %s148_s20 }
  0x10   :  { %v169_v6 = vunpack.c.h.bf16 %v178_v1  ;;  %v114_v9 = vld [vmem:[%s369_s2] sm:$0x1]  ;;  %v172_v10 = vunpack.c.l.bf16 %v179_v2  ;;  %v173_v11 = vunpack.c.h.bf16 %v179_v2  ;;  %v176_v12 = vunpack.c.l.bf16 %v180_v7  ;;  %v133_v20 = vld [vmem:[#allocation7] sm:$0xff]  ;;  %v135_v21 = vld [vmem:[#allocation7 + $0x10] sm:$0xf]  ;;  %s299_s2 = smov [#allocation8]  }
  0x11   :  { %v177_v13 = vunpack.c.h.bf16 %v180_v7  ;;  %v121_v14 = vld [vmem:[%s370_s3] sm:$0x1]  ;;  %v96_v16 = vadd.f32 %v165_v4, %v164_v3  ;;  %v109_v18 = vsel %vm108_vm0, %v107_v8, 0.0  ;;  %v116_v19 = vsel %vm115_vm1, %v114_v9, 0.0  ;;  %v134_v27 = vld [vmem:[#allocation7 + $0x8] sm:$0xff]  ;;  %s146_s3 = sshll.u32 %s299_s2, 4  ;;  %s147_s3 = int_to_ptr.vmem [resolvable:$true] %s146_s3 }
  0x12   :  { %v127_v15 = vld [vmem:[%s371_s4] sm:$0x1]  ;;  %v97_v17 = vadd.f32 %v169_v6, %v168_v5  ;;  %v98_v22 = vadd.f32 %v173_v11, %v172_v10  ;;  %v122_v25 = vsel %vm115_vm1, %v121_v14, 0.0  ;;  %v137_v28 = vsel %vm136_vm2, %v135_v21, 0.0  ;;  %111 = vst [vmem:[#allocation8 + $0x8] sm:$0xff] %v109_v18 }
  0x13   :  { %v99_v23 = vadd.f32 %v177_v13, %v176_v12  ;;  %v128_v26 = vsel %vm115_vm1, %v127_v15, 0.0  ;;  %v138_v30 = vadd.f32 %v137_v28, %v133_v20  ;;  %118 = vst [vmem:[#allocation8 + $0x10] sm:$0xff] %v116_v19 }
  0x14   :  { %v100_v24 = vadd.f32 %v97_v17, %v96_v16  ;;  %124 = vst [vmem:[#allocation8 + $0x18] sm:$0xff] %v122_v25 }
  0x15   :  { %v101_v29 = vadd.f32 %v99_v23, %v98_v22  ;;  %v139_v32 = vadd.f32 %v138_v30, %v134_v27  ;;  %130 = vst [vmem:[#allocation8 + $0x20] sm:$0xff] %v128_v26 }
  0x17   :  { %v102_v31 = vadd.f32 %v101_v29, %v100_v24  ;;  %141 = vst [vmem:[#allocation8 + $0x28] sm:$0xff] %v139_v32 }
  0x19   :  { %104 = vst [vmem:[#allocation8] sm:$0xff] %v102_v31 }
  0x1a   :  { %154 = dma.vmem_to_hbm [thread:$0]  %s147_s3, 768, %s149_s20, [#allocation4], %s297_s13, %s297_s13, %s298_s14  }
  0x1b   :  { %290 = dma.done.wait [#allocation4], 768  }
  0x1c   :  { %291 = vsyncadd [#allocation4], 4294966528 }
  0x1d   :  { %159 = vsyncpa [#allocation3], 1 }
  0x1e   :  { %160 = vsyncpa [#allocation6], 1 }
  0x1f   :  { %161 = vsyncpa [#allocation4], 1 }

</bundles_post_ra>
